<compile_context>
chip_gen: v7x
topology: tpu7x:2x2x1
jax: 0.10.0
libtpu: 0.0.40
codegen_flags: <defaults>
</compile_context>

<pallas_src>
import jax
import jax.numpy as jnp
from jax.experimental import pallas as pl
from jax.experimental.pallas import tpu as pltpu


def _hypanet_kernel(x_ref, w1_ref, b1_ref, w2_ref, b2_ref, w3_ref, b3_ref, o_ref):
    # x_ref : (1, Cin, TP)   pixels on lanes, f32
    # w1_ref: (C, Cin) f32   b1_ref: (C, 1) f32
    # w2_ref: (C, C)  bf16   b2_ref: (C, 1) f32
    # w3_ref: (out, C) bf16  b3_ref: (out, 1) f32
    # o_ref : (1, out, TP)
    x = x_ref[0].astype(jnp.float32)                       # (Cin, TP)
    w1 = w1_ref[...].astype(jnp.float32)                   # (C, Cin)

    # ---- Layer 1: K = Cin is tiny -> broadcast FMAs on the VPU (skip MXU). ----
    cin = x.shape[0]
    h1 = b1_ref[...] + w1[:, 0:1] * x[0:1, :]              # bias folded in
    for c in range(1, cin):                                # static, Cin is small
        h1 = h1 + w1[:, c:c + 1] * x[c:c + 1, :]
    h1 = jnp.maximum(h1, 0.0)                              # ReLU, (C, TP) f32

    # ---- Layer 2: (C, C) @ (C, TP) on the MXU, bf16 operands / f32 accumulate. ----
    h2 = jnp.dot(w2_ref[...], h1.astype(jnp.bfloat16),
                 preferred_element_type=jnp.float32)
    h2 = jnp.maximum(h2 + b2_ref[...], 0.0)                # ReLU, (C, TP) f32

    # ---- Layer 3: (out, C) @ (C, TP) on the MXU, bf16 operands / f32 accumulate. ----
    z = jnp.dot(w3_ref[...], h2.astype(jnp.bfloat16),
                preferred_element_type=jnp.float32) + b3_ref[...]

    # Softplus (torch.nn.Softplus: beta=1, threshold=20 -> linear above 20).
    sp = jnp.where(z > 20.0, z, jnp.log1p(jnp.exp(z)))

    o_ref[0] = (sp + 1e-6).astype(o_ref.dtype)


def _choose_pixel_tile(HW, N, cap):
    """Pick a lane-dense pixel tile.

    Prefer the largest multiple of 128 that divides HW exactly (no pad/slice in
    the wrapper).  Fall back to a padded tile otherwise.  Keep >= 2 grid steps
    so the v7x megacore split has work on both cores.
    Returns (tp, n_ptiles, HW_pad).
    """
    cap = max(128, (cap // 128) * 128)

    best = 0
    t = 128
    limit = min(cap, HW)
    while t <= limit:
        if HW % t == 0:
            best = t
        t += 128

    if best > 0:
        tp = best
    else:
        # HW has no multiple-of-128 divisor (or HW < 128): pad the tail.
        tp = min(cap, ((HW + 127) // 128) * 128)

    n_ptiles = pl.cdiv(HW, tp)

    # Megacore: avoid a 1-step grid (v7x has 2 TensorCores).
    if N * n_ptiles < 2 and tp >= 256 and (tp // 2) % 128 == 0:
        tp = tp // 2
        n_ptiles = pl.cdiv(HW, tp)

    HW_pad = n_ptiles * tp
    return tp, n_ptiles, HW_pad


def hypanet_forward(x_nchw, params, *, tile_p=32768):
    """x_nchw: (N, in_nc, H, W) float32.  Returns (N, out_nc, H, W)."""
    w1, b1, w2, b2, w3, b3 = params
    N, Cin, H, W = x_nchw.shape
    C = w1.shape[1]
    out_nc = w3.shape[1]
    HW = H * W

    # Transposed weight/bias layout for the in-kernel "W^T @ x" orientation.
    w1t = w1.T.astype(jnp.float32)                  # (C, Cin)   VPU layer -> f32
    w2t = w2.T.astype(jnp.bfloat16)                 # (C, C)     MXU operand
    w3t = w3.T.astype(jnp.bfloat16)                 # (out_nc, C) MXU operand
    b1t = b1.reshape(C, 1).astype(jnp.float32)
    b2t = b2.reshape(C, 1).astype(jnp.float32)
    b3t = b3.reshape(out_nc, 1).astype(jnp.float32)

    tp, n_ptiles, HW_pad = _choose_pixel_tile(HW, N, tile_p)

    x3 = x_nchw.reshape(N, Cin, HW)
    if HW_pad != HW:
        # Only for awkward H*W: pad the last (lane) axis of the flat tensor.
        x3 = jnp.pad(x3, ((0, 0), (0, 0), (0, HW_pad - HW)))

    grid = (N, n_ptiles)

    cost = pl.CostEstimate(
        flops=2 * N * HW * (Cin * C + C * C + C * out_nc),
        transcendentals=2 * N * HW * out_nc,
        bytes_accessed=4 * (N * HW * (Cin + out_nc)
                            + Cin * C + 2 * C + out_nc)
        + 2 * (C * C + C * out_nc),
    )

    out = pl.pallas_call(
        _hypanet_kernel,
        out_shape=jax.ShapeDtypeStruct((N, out_nc, HW_pad), x_nchw.dtype),
        grid_spec=pltpu.PrefetchScalarGridSpec(
            num_scalar_prefetch=0,
            grid=grid,
            in_specs=[
                pl.BlockSpec((1, Cin, tp), lambda n, p: (n, 0, p)),     # x tile
                pl.BlockSpec((C, Cin), lambda n, p: (0, 0)),            # w1^T (f32)
                pl.BlockSpec((C, 1), lambda n, p: (0, 0)),              # b1
                pl.BlockSpec((C, C), lambda n, p: (0, 0)),              # w2^T (bf16)
                pl.BlockSpec((C, 1), lambda n, p: (0, 0)),              # b2
                pl.BlockSpec((out_nc, C), lambda n, p: (0, 0)),         # w3^T (bf16)
                pl.BlockSpec((out_nc, 1), lambda n, p: (0, 0)),         # b3
            ],
            out_specs=pl.BlockSpec((1, out_nc, tp), lambda n, p: (n, 0, p)),
        ),
        compiler_params=pltpu.CompilerParams(
            dimension_semantics=("parallel", "parallel"),
            vmem_limit_bytes=48 * 1024 * 1024,   # safe on v5e/v6e (128 MiB) and v7x (64 MiB)
        ),
        cost_estimate=cost,
    )(x3, w1t, b1t, w2t, b2t, w3t, b3t)

    if HW_pad != HW:
        out = out[:, :, :HW]
    return out.reshape(N, out_nc, H, W)


def init_hypanet_params(key, in_nc=2, out_nc=8, channel=64, dtype=jnp.float32):
    """Deterministic synthetic parameters (shapes match HyPaNet.__init__)."""
    k1, k2, k3, k4, k5, k6 = jax.random.split(key, 6)
    # 1x1 conv weights stored as (C_in, C_out) matrices; biases as (1, C_out).
    w1 = jax.random.normal(k1, (in_nc, channel), dtype) * (1.0 / jnp.sqrt(in_nc))
    b1 = jax.random.normal(k2, (1, channel), dtype) * 0.01
    w2 = jax.random.normal(k3, (channel, channel), dtype) * (1.0 / jnp.sqrt(channel))
    b2 = jax.random.normal(k4, (1, channel), dtype) * 0.01
    w3 = jax.random.normal(k5, (channel, out_nc), dtype) * (1.0 / jnp.sqrt(channel))
    b3 = jax.random.normal(k6, (1, out_nc), dtype) * 0.01
    return (w1, b1, w2, b2, w3, b3)


def hypanet_reference(x_nchw, params):
    """Pure-JAX reference with the same bf16-operand / f32-accumulate matmuls."""
    w1, b1, w2, b2, w3, b3 = params
    N, Cin, H, W = x_nchw.shape
    x = jnp.transpose(x_nchw, (0, 2, 3, 1)).reshape(-1, Cin)
    h1 = jnp.maximum(x @ w1 + b1, 0.0)
    h2 = jnp.dot(h1.astype(jnp.bfloat16), w2.astype(jnp.bfloat16),
                 preferred_element_type=jnp.float32)
    h2 = jnp.maximum(h2 + b2, 0.0)
    z = jnp.dot(h2.astype(jnp.bfloat16), w3.astype(jnp.bfloat16),
                preferred_element_type=jnp.float32) + b3
    sp = jnp.where(z > 20.0, z, jnp.log1p(jnp.exp(z)))
    out = sp + 1e-6
    return jnp.transpose(out.reshape(N, H, W, -1), (0, 3, 1, 2))


if __name__ == "__main__":
    key = jax.random.PRNGKey(0)
    kx, kp = jax.random.split(key)

    # Small shapes consistent with the module defaults: in_nc=2, out_nc=8, channel=64.
    N, in_nc, H, W = 2, 2, 16, 16
    x = jax.random.normal(kx, (N, in_nc, H, W), jnp.float32)
    params = init_hypanet_params(kp, in_nc=in_nc, out_nc=8, channel=64)

    out = hypanet_forward(x, params)
    out = jax.block_until_ready(out)

    ref = hypanet_reference(x, params)
    assert out.shape == (N, 8, H, W), out.shape
    assert bool(jnp.all(out > 0.0)), "softplus + 1e-6 must be strictly positive"
    assert jnp.allclose(out, ref, atol=1e-3, rtol=1e-3), "mismatch vs reference"

    print("KERNEL_OK")
</pallas_src>

<mosaic_0001>
module attributes {stable_mosaic.version = 11 : i64} {
  func.func @_hypanet_kernel(%arg0: i32, %arg1: i32, %arg2: memref<1x2x256xf32, #tpu.memory_space<vmem>>, %arg3: memref<64x2xf32, #tpu.memory_space<vmem>>, %arg4: memref<64x1xf32, #tpu.memory_space<vmem>>, %arg5: memref<64x64xbf16, #tpu.memory_space<vmem>>, %arg6: memref<64x1xf32, #tpu.memory_space<vmem>>, %arg7: memref<8x64xbf16, #tpu.memory_space<vmem>>, %arg8: memref<8x1xf32, #tpu.memory_space<vmem>>, %arg9: memref<1x8x256xf32, #tpu.memory_space<vmem>>) attributes {dimension_semantics = [#tpu.dimension_semantics<parallel>, #tpu.dimension_semantics<parallel>], iteration_bounds = array<i64: 2, 1>, scalar_prefetch = 0 : i64, scratch_operands = 0 : i64, tpu.core_type = #tpu.core_type<tc>, window_params = [{transform_indices = @transform_0, window_bounds = array<i64: 1, 2, 256>}, {pipeline_mode = #tpu.pipeline_mode<synchronous>, transform_indices = @transform_1, window_bounds = array<i64: 64, 2>}, {pipeline_mode = #tpu.pipeline_mode<synchronous>, transform_indices = @transform_2, window_bounds = array<i64: 64, 1>}, {pipeline_mode = #tpu.pipeline_mode<synchronous>, transform_indices = @transform_3, window_bounds = array<i64: 64, 64>}, {pipeline_mode = #tpu.pipeline_mode<synchronous>, transform_indices = @transform_4, window_bounds = array<i64: 64, 1>}, {pipeline_mode = #tpu.pipeline_mode<synchronous>, transform_indices = @transform_5, window_bounds = array<i64: 8, 64>}, {pipeline_mode = #tpu.pipeline_mode<synchronous>, transform_indices = @transform_6, window_bounds = array<i64: 8, 1>}, {transform_indices = @transform_7, window_bounds = array<i64: 1, 8, 256>}]} {
    %c0 = arith.constant 0 : index
    %c0_0 = arith.constant 0 : index
    %c0_1 = arith.constant 0 : index
    %0 = vector.load %arg2[%c0, %c0_0, %c0_1] : memref<1x2x256xf32, #tpu.memory_space<vmem>>, vector<1x2x256xf32>
    %1 = vector.shape_cast %0 : vector<1x2x256xf32> to vector<2x256xf32>
    %c0_2 = arith.constant 0 : index
    %c0_3 = arith.constant 0 : index
    %2 = vector.load %arg3[%c0_2, %c0_3] : memref<64x2xf32, #tpu.memory_space<vmem>>, vector<64x2xf32>
    %c0_4 = arith.constant 0 : index
    %c0_5 = arith.constant 0 : index
    %3 = vector.load %arg4[%c0_4, %c0_5] : memref<64x1xf32, #tpu.memory_space<vmem>>, vector<64x1xf32>
    %4 = vector.extract_strided_slice %2 {offsets = [0, 0], sizes = [64, 1], strides = [1, 1]} : vector<64x2xf32> to vector<64x1xf32>
    %5 = vector.extract_strided_slice %1 {offsets = [0, 0], sizes = [1, 256], strides = [1, 1]} : vector<2x256xf32> to vector<1x256xf32>
    %6 = vector.broadcast %4 : vector<64x1xf32> to vector<64x256xf32>
    %7 = vector.broadcast %5 : vector<1x256xf32> to vector<64x256xf32>
    %8 = arith.mulf %6, %7 : vector<64x256xf32>
    %9 = vector.broadcast %3 : vector<64x1xf32> to vector<64x256xf32>
    %10 = arith.addf %9, %8 : vector<64x256xf32>
    %11 = vector.extract_strided_slice %2 {offsets = [0, 1], sizes = [64, 1], strides = [1, 1]} : vector<64x2xf32> to vector<64x1xf32>
    %12 = vector.extract_strided_slice %1 {offsets = [1, 0], sizes = [1, 256], strides = [1, 1]} : vector<2x256xf32> to vector<1x256xf32>
    %13 = vector.broadcast %11 : vector<64x1xf32> to vector<64x256xf32>
    %14 = vector.broadcast %12 : vector<1x256xf32> to vector<64x256xf32>
    %15 = arith.mulf %13, %14 : vector<64x256xf32>
    %16 = arith.addf %10, %15 : vector<64x256xf32>
    %cst = arith.constant 0.000000e+00 : f32
    %17 = vector.broadcast %cst : f32 to vector<64x256xf32>
    %18 = arith.maximumf %16, %17 : vector<64x256xf32>
    %c0_6 = arith.constant 0 : index
    %c0_7 = arith.constant 0 : index
    %19 = vector.load %arg5[%c0_6, %c0_7] : memref<64x64xbf16, #tpu.memory_space<vmem>>, vector<64x64xbf16>
    %20 = arith.truncf %18 : vector<64x256xf32> to vector<64x256xbf16>
    %cst_8 = arith.constant dense<0.000000e+00> : vector<64x256xf32>
    %21 = tpu.matmul %19, %20, %cst_8 {dimension_numbers = #tpu.dot_dimension_numbers<[1], [0], [0], [1], [0, 0, 1, 1], [], []>} : vector<64x64xbf16>, vector<64x256xbf16>, vector<64x256xf32> -> vector<64x256xf32>
    %c0_9 = arith.constant 0 : index
    %c0_10 = arith.constant 0 : index
    %22 = vector.load %arg6[%c0_9, %c0_10] : memref<64x1xf32, #tpu.memory_space<vmem>>, vector<64x1xf32>
    %23 = vector.broadcast %22 : vector<64x1xf32> to vector<64x256xf32>
    %24 = arith.addf %21, %23 : vector<64x256xf32>
    %cst_11 = arith.constant 0.000000e+00 : f32
    %25 = vector.broadcast %cst_11 : f32 to vector<64x256xf32>
    %26 = arith.maximumf %24, %25 : vector<64x256xf32>
    %c0_12 = arith.constant 0 : index
    %c0_13 = arith.constant 0 : index
    %27 = vector.load %arg7[%c0_12, %c0_13] : memref<8x64xbf16, #tpu.memory_space<vmem>>, vector<8x64xbf16>
    %28 = arith.truncf %26 : vector<64x256xf32> to vector<64x256xbf16>
    %cst_14 = arith.constant dense<0.000000e+00> : vector<8x256xf32>
    %29 = tpu.matmul %27, %28, %cst_14 {dimension_numbers = #tpu.dot_dimension_numbers<[1], [0], [0], [1], [0, 0, 1, 1], [], []>} : vector<8x64xbf16>, vector<64x256xbf16>, vector<8x256xf32> -> vector<8x256xf32>
    %c0_15 = arith.constant 0 : index
    %c0_16 = arith.constant 0 : index
    %30 = vector.load %arg8[%c0_15, %c0_16] : memref<8x1xf32, #tpu.memory_space<vmem>>, vector<8x1xf32>
    %31 = vector.broadcast %30 : vector<8x1xf32> to vector<8x256xf32>
    %32 = arith.addf %29, %31 : vector<8x256xf32>
    %cst_17 = arith.constant 2.000000e+01 : f32
    %33 = vector.broadcast %cst_17 : f32 to vector<8x256xf32>
    %34 = arith.cmpf ogt, %32, %33 : vector<8x256xf32>
    %35 = math.exp %32 : vector<8x256xf32>
    %36 = math.log1p %35 : vector<8x256xf32>
    %37 = arith.select %34, %32, %36 : vector<8x256xi1>, vector<8x256xf32>
    %cst_18 = arith.constant 9.99999997E-7 : f32
    %38 = vector.broadcast %cst_18 : f32 to vector<8x256xf32>
    %39 = arith.addf %37, %38 : vector<8x256xf32>
    %c0_19 = arith.constant 0 : index
    %c0_20 = arith.constant 0 : index
    %c0_21 = arith.constant 0 : index
    %40 = vector.load %arg9[%c0_19, %c0_20, %c0_21] : memref<1x8x256xf32, #tpu.memory_space<vmem>>, vector<1x8x256xf32>
    %41 = vector.shape_cast %40 : vector<1x8x256xf32> to vector<8x256xf32>
    %42 = vector.shape_cast %39 : vector<8x256xf32> to vector<1x8x256xf32>
    tpu.vector_store %arg9[%c0_19, %c0_20, %c0_21], %42 {strides = array<i32>} : memref<1x8x256xf32, #tpu.memory_space<vmem>>, vector<1x8x256xf32>,
    return
  }
  func.func @transform_0(%arg0: i32, %arg1: i32) -> (i32, i32, i32) {
    %c0_i32 = arith.constant 0 : i32
    %c0_i32_0 = arith.constant 0 : i32
    return %arg0, %c0_i32, %arg1 : i32, i32, i32
  }
  func.func @transform_1(%arg0: i32, %arg1: i32) -> (i32, i32) {
    %c0_i32 = arith.constant 0 : i32
    %c0_i32_0 = arith.constant 0 : i32
    %c0_i32_1 = arith.constant 0 : i32
    return %c0_i32, %c0_i32_0 : i32, i32
  }
  func.func @transform_2(%arg0: i32, %arg1: i32) -> (i32, i32) {
    %c0_i32 = arith.constant 0 : i32
    %c0_i32_0 = arith.constant 0 : i32
    %c0_i32_1 = arith.constant 0 : i32
    return %c0_i32, %c0_i32_0 : i32, i32
  }
  func.func @transform_3(%arg0: i32, %arg1: i32) -> (i32, i32) {
    %c0_i32 = arith.constant 0 : i32
    %c0_i32_0 = arith.constant 0 : i32
    %c0_i32_1 = arith.constant 0 : i32
    return %c0_i32, %c0_i32_0 : i32, i32
  }
  func.func @transform_4(%arg0: i32, %arg1: i32) -> (i32, i32) {
    %c0_i32 = arith.constant 0 : i32
    %c0_i32_0 = arith.constant 0 : i32
    %c0_i32_1 = arith.constant 0 : i32
    return %c0_i32, %c0_i32_0 : i32, i32
  }
  func.func @transform_5(%arg0: i32, %arg1: i32) -> (i32, i32) {
    %c0_i32 = arith.constant 0 : i32
    %c0_i32_0 = arith.constant 0 : i32
    %c0_i32_1 = arith.constant 0 : i32
    return %c0_i32, %c0_i32_0 : i32, i32
  }
  func.func @transform_6(%arg0: i32, %arg1: i32) -> (i32, i32) {
    %c0_i32 = arith.constant 0 : i32
    %c0_i32_0 = arith.constant 0 : i32
    %c0_i32_1 = arith.constant 0 : i32
    return %c0_i32, %c0_i32_0 : i32, i32
  }
  func.func @transform_7(%arg0: i32, %arg1: i32) -> (i32, i32, i32) {
    %c0_i32 = arith.constant 0 : i32
    %c0_i32_0 = arith.constant 0 : i32
    return %arg0, %c0_i32, %arg1 : i32, i32, i32
  }
}

</mosaic_0001>

<bundles_post_ra>
// kernel: tpu_custom_call.1
= control target key start
LH: loop header
LB: loop body
LE: loop exit
PB: predicated region body
PF: predicated region fallthrough
CT: control target
= control target key end

     0   :  { %12 = vsyncpa [#allocation3], 0  ;;  %s1418_s0 = inlined_call_operand.vmem [shape: f32[2,2,256], index: 0, kind: input, shape index: {}]   ;;  %s1419_s1 = inlined_call_operand.vmem [shape: f32[64,2], index: 1, kind: input, shape index: {}]   ;;  %s1420_s2 = inlined_call_operand.vmem [shape: f32[64,1], index: 2, kind: input, shape index: {}]   ;;  %s1421_s3 = inlined_call_operand.vmem [shape: bf16[64,64], index: 3, kind: input, shape index: {}]   ;;  %s1422_s4 = inlined_call_operand.vmem [shape: f32[64,1], index: 4, kind: input, shape index: {}]   ;;  %s1423_s5 = inlined_call_operand.vmem [shape: bf16[8,64], index: 5, kind: input, shape index: {}]   ;;  %s1424_s6 = inlined_call_operand.vmem [shape: f32[8,1], index: 6, kind: input, shape index: {}]   ;;  %s1425_s7 = inlined_call_operand.hbm [shape: f32[2,8,256], index: 7, kind: output, shape index: {}]  }
   0x1   :  { %14 = vsyncpa [#allocation3 + $0x1], 0  ;;  %s1151_s24 = smov 0   ;;  %s1153_s25 = smov 0  }
   0x2   :  { %s1155_s26 = smov 0   ;;  %s1157_s27 = smov 0  }
   0x3   :  { %s1159_s28 = smov 0   ;;  %s1161_s29 = smov 0  }
   0x4 LB: > { %s923_s30 = sadd.s32 4294967295, %s1106_s29   ;;  %s924_s8 = sadd.s32 4294967294, %s1106_s29   ;;  %s1106_s29 = sphi %s1161_s29, %s20_s29   ;;  %s1102_s28 = sphi %s1159_s28, %s1432_s28   ;;  %s1098_s27 = sphi %s1157_s27, %s1431_s27   ;;  %s1094_s26 = sphi %s1155_s26, %s1430_s26   ;;  %s1090_s25 = sphi %s1153_s25, %s1429_s25   ;;  %s1086_s24 = sphi %s1151_s24, %s1428_s24  }
   0x5   : > { %s32_s9 = sadd.s32 1, %s1102_s28  ;;  %s195_s10 = sadd.s32 1, %s1094_s26 }
   0x6   : > { %p34_p0 = scmp.ge.s32.totalorder %s32_s9, 2  ;;  %p205_p1 = scmp.ne.s32.totalorder %s1094_s26, %s1090_s25 }
   0x7   : > { %p206_p2 = scmp.eq.s32.totalorder %s923_s30, 1  ;;  %p211_p3 = scmp.ne.s32.totalorder %s1090_s25, %s1086_s24 }
   0x8   : > { %s1434_s9 = smov (%p34_p0, %s32_s9), 0  ;;  %p212_p5 = scmp.eq.s32.totalorder %s924_s8, 1 }
   0x9   : > { %p1191_p4 = por %p206_p2, %p205_p1  ;;  %s190_s12 = ssub.s32 %s1102_s28, %s1434_s9 }
   0xa   : > { %p927_p6 = scmp.ge.s32.totalorder %s1106_s29, 1  ;;  %p193_p7 = scmp.eq.s32.totalorder %s190_s12, 0 }
   0xb   : > { %p1198_p8 = por %p212_p5, %p211_p3  ;;  %p261_p9 = scmp.lt.s32.totalorder %s1106_s29, 3 }
   0xc   : > { %s1204_s14 = scalar_select %p193_p7, %s1094_s26, %s195_s10  }
   0xd   : > { %p262_p10 = pnand %p927_p6, %p261_p9 }
   0xe   : > { %v318_v0 = vld [vmem:[%s1420_s2] sm:$0xff] (!%p262_p10)  ;;  %v1108_v2 = vmov (!%p262_p10), 0   ;;  %v319_v3 = vld [vmem:[%s1420_s2 + $0x8] sm:$0xff] (!%p262_p10)  ;;  %v313_v5 = vld [vmem:[%s1419_s1 + $0x18] sm:$0xff] (!%p262_p10)  ;;  %v1109_v6 = vmov (!%p262_p10), 1   ;;  %p298_p11 = scmp.lt.s32.totalorder (!%p262_p10), %s1098_s27, 1  ;;  %v367_v27 = vlaneseq (!%p262_p10) }
   0xf   : > { %265 = sbr.rel (%p262_p10) target bundleno = 729 (0x2d9), region = 48  ;;  %v310_v1 = vld [vmem:[%s1419_s1] sm:$0xff] (!%p262_p10)  ;;  %1005 = vset.pattern.permute.xlu1 (!%p262_p10), %v1108_v2  ;;  %1004 = vset.pattern.permute.xlu0 (!%p262_p10), %v1108_v2  ;;  %v311_v4 = vld [vmem:[%s1419_s1 + $0x8] sm:$0xff] (!%p262_p10)  ;;  %v312_v8 = vld [vmem:[%s1419_s1 + $0x10] sm:$0xff] (!%p262_p10)  ;;  %vm639_vm0 = vcmask (!%p262_p10), 523264   ;;  %s294_s15 = sand.u32 (!%p262_p10), 1, %s1090_s25  }
  0x10   : > { %403 = vperm.xlu1 (!%p262_p10), %1005, %v318_v0   ;;  %328 = vperm.xlu0 (!%p262_p10), %1004, %v310_v1   ;;  %v315_v7 = vld [vmem:[%s1419_s1 + $0x28] sm:$0xff] (!%p262_p10)  ;;  %v317_v9 = vld [vmem:[%s1419_s1 + $0x38] sm:$0xff] (!%p262_p10)  ;;  %v320_v10 = vld [vmem:[%s1420_s2 + $0x10] sm:$0xff] (!%p262_p10)  ;;  %v368_v30 = vshrl.u32 (!%p262_p10), %v367_v27, 7  ;;  %s928_s16 = sshll.u32 (!%p262_p10), %s294_s15, 4  ;;  %s1110_s30 = smov (!%p262_p10), [#allocation2]  }
  0x11   : > { %684 = vmatprep.mubr.bf16.mxu0 (!%p262_p10), %v1108_v2  ;;  %791 = vmatprep.mubr.bf16.mxu1 (!%p262_p10), %v1108_v2  ;;  %v321_v11 = vld [vmem:[%s1420_s2 + $0x18] sm:$0xff] (!%p262_p10)  ;;  %v314_v12 = vld [vmem:[%s1419_s1 + $0x20] sm:$0xff] (!%p262_p10)  ;;  %v316_v13 = vld [vmem:[%s1419_s1 + $0x30] sm:$0xff] (!%p262_p10)  ;;  %s296_s18 = scalar_lea.vmem (!%p262_p10), [#allocation2], %s928_s16  ;;  %s1032_s8 = sshll.u32 (!%p262_p10), %s1110_s30, 4  ;;  %s1033_s8 = int_to_ptr.vmem [resolvable:$false] %s1032_s8 }
  0x12   : > { %v322_v14 = vld [vmem:[%s1420_s2 + $0x20] sm:$0xff] (!%p262_p10)  ;;  %v323_v15 = vld [vmem:[%s1420_s2 + $0x28] sm:$0xff] (!%p262_p10)  ;;  %v324_v16 = vld [vmem:[%s1420_s2 + $0x30] sm:$0xff] (!%p262_p10)  ;;  %v369_v33 = vsub.s32 (!%p262_p10), 0, %v368_v30  ;;  %v373_v34 = vsub.s32 (!%p262_p10), 2, %v368_v30  ;;  %v491_v36 = vsub.s32 (!%p262_p10), 1, %v368_v30 }
  0x13   : > { %v325_v17 = vld [vmem:[%s1420_s2 + $0x38] sm:$0xff] (!%p262_p10)  ;;  %v571_v18 = vld [vmem:[%s1422_s4] sm:$0xff] (!%p262_p10)  ;;  %v572_v19 = vld [vmem:[%s1422_s4 + $0x8] sm:$0xff] (!%p262_p10)  ;;  %v495_v37 = vsub.s32 (!%p262_p10), 3, %v368_v30  ;;  %s847_s19 = sshll.u32 (!%p262_p10), %s296_s18, 4  ;;  %s1373_s19 = int_to_ptr.vmem [resolvable:$true] %s847_s19 }
  0x14   : > { %408 = vperm.xlu1 (!%p262_p10), %1005, %v319_v3   ;;  %333 = vperm.xlu0 (!%p262_p10), %1004, %v311_v4   ;;  %v573_v20 = vld [vmem:[%s1422_s4 + $0x10] sm:$0xff] (!%p262_p10)  ;;  %v575_v21 = vld [vmem:[%s1422_s4 + $0x20] sm:$0xff] (!%p262_p10)  ;;  %v574_v22 = vld [vmem:[%s1422_s4 + $0x18] sm:$0xff] (!%p262_p10)  ;;  %s1028_s23 = scalar_lea.vmem (!%p262_p10), %s1373_s19, 256  ;;  %p1035_p1 = scmp.lt.s32.totalorder (!%p262_p10), %s1373_s19, %s1033_s8 }
  0x15   : > { %v577_v23 = vld [vmem:[%s1422_s4 + $0x30] sm:$0xff] (!%p262_p10)  ;;  %v576_v24 = vld [vmem:[%s1422_s4 + $0x28] sm:$0xff] (!%p262_p10)  ;;  %v750_v25 = vld [vmem:[%s1424_s6] sm:$0xff] (!%p262_p10)  ;;  %p1029_p12 = scmp.ne.s32.totalorder (!%p262_p10), %s1373_s19, %s1028_s23 }
  0x16   : > { %v578_v26 = vld [vmem:[%s1422_s4 + $0x38] sm:$0xff]  ;;  %s299_s10 = scalar_select %p298_p11, %s1098_s27, 1 }
  0x17   : > { %p1030_p13 = pnand %p1029_p12, %p1191_p4 }
  0x18   : > { %1006 = vset.pattern.permute.xlu1 %v1109_v6  ;;  %343 = vperm.xlu0 %1004, %v313_v5   ;;  %s945_s12 = sshll.u32 %s299_s10, 2  ;;  %s1034_s10 = scalar_lea.vmem %s1033_s8, 512 }
  0x19   : > { %462 = vperm.xlu1 %1006, %v311_v4   ;;  %s305_s17 = scalar_lea.vmem %s1418_s0, %s945_s12  ;;  %p1031_p0 = pneg %p1030_p13 }
  0x1a   : > { %v309_v35 = vld [vmem:[%s305_s17] sm:$0xf]  ;;  %s946_s17 = sshll.u32 %s1098_s27, 8  ;;  %s831_s27 = scalar_lea.sflag [#allocation3], %s294_s15 }
  0x1b   : > { %v370_v39 = vrot.slane %v309_v35, %v369_v33  ;;  %v374_v40 = vrot.slane %v309_v35, %v373_v34  ;;  %v492_v42 = vrot.slane %v309_v35, %v491_v36  ;;  %v496_v43 = vrot.slane %v309_v35, %v495_v37  ;;  %s1371_s22 = scalar_lea.hbm %s1425_s7, %s946_s17  ;;  %p1036_p2 = scmp.lt.s32.totalorder %s1034_s10, %s1028_s23 }
  0x1c   : > { %353 = vperm.xlu0 %1004, %v315_v7  }
  0x1d   : > { %1007 = vset.pattern.permute.xlu1 %v1108_v2  ;;  %v1297_v45 = vrot.slane %v370_v39, %v369_v33  ;;  %v1299_v46 = vrot.slane %v374_v40, %v369_v33  ;;  %v1301_v48 = vrot.slane %v492_v42, %v491_v36  ;;  %v1303_v49 = vrot.slane %v496_v43, %v491_v36  ;;  %p1037_p3 = por %p1036_p2, %p1035_p1 }
  0x1e   : > { %338 = vperm.xlu1 %1007, %v312_v8  }
  0x1f   : > { %p1038_p5 = pnand %p1037_p3, %p1031_p0 }
  0x20   : > { %363 = vperm.xlu0 %1004, %v317_v9  }
  0x22   : > { %413 = vperm.xlu1 %1007, %v320_v10  }
  0x24   : > { %1012 = vset.pattern.permute.xlu0 %v1109_v6 }
  0x25   : > { %458 = vperm.xlu0 %1012, %v310_v1  }
  0x26   : > { %418 = vperm.xlu1 %1007, %v321_v11  }
  0x29   : > { %466 = vperm.xlu0 %1012, %v312_v8  }
  0x2a   : > { %1008 = vset.pattern.permute.xlu1 %v1109_v6 }
  0x2b   : > { %470 = vperm.xlu1 %1008, %v313_v5  }
  0x2d   : > { %474 = vperm.xlu0 %1012, %v314_v12  }
  0x2f   : > { %1009 = vset.pattern.permute.xlu1 %v1108_v2 }
  0x30   : > { %348 = vperm.xlu1 %1009, %v314_v12  }
  0x31   : > { %482 = vperm.xlu0 %1012, %v316_v13  }
  0x34   : > { %423 = vperm.xlu1 %1009, %v322_v14  }
  0x35   : > { %1015 = vset.pattern.permute.xlu0 %v1108_v2 }
  0x36   : > { %586 = vperm.xlu0 %1015, %v572_v19  }
  0x38   : > { %428 = vperm.xlu1 %1009, %v323_v15  }
  0x3a   : > { %601 = vperm.xlu0 %1015, %v575_v21  }
  0x3c   : > { %1010 = vset.pattern.permute.xlu1 %v1109_v6 }
  0x3d   : > { %478 = vperm.xlu1 %1010, %v315_v7  }
  0x3e   : > { %611 = vperm.xlu0 %1015, %v577_v23  }
  0x41   : > { %1011 = vset.pattern.permute.xlu1 %v1108_v2 }
  0x42   : > { %358 = vperm.xlu1 %1011, %v316_v13   ;;  %753 = vperm.xlu0 %1015, %v750_v25  }
  0x46   : > { %433 = vperm.xlu1 %1011, %v324_v16  }
  0x4a   : > { %438 = vperm.xlu1 %1011, %v325_v17  }
  0x4e   : > { %1013 = vset.pattern.permute.xlu1 %v1109_v6 }
  0x4f   : > { %486 = vperm.xlu1 %1013, %v317_v9  }
  0x53   : > { %1014 = vset.pattern.permute.xlu1 %v1108_v2 }
  0x54   : > { %581 = vperm.xlu1 %1014, %v571_v18  }
  0x58   : > { %591 = vperm.xlu1 %1014, %v573_v20  }
  0x5c   : > { %596 = vperm.xlu1 %1014, %v574_v22  }
  0x60   : > { %606 = vperm.xlu1 %1014, %v576_v24  }
  0x64   : > { %616 = vperm.xlu1 %1014, %v578_v26  }
  0x8f   : > { %v404_v28 = vpop.permute.xlu1 %403  ;;  %v329_v29 = vpop.permute.xlu0 %328 }
  0x90   : > { %v385_v51 = vmul.f32 %v1297_v45, %v329_v29  ;;  %v386_v52 = vmul.f32 %v1299_v46, %v329_v29 }
  0x92   : > { %v441_v58 = vadd.f32 %v404_v28, %v385_v51  ;;  %v442_v59 = vadd.f32 %v404_v28, %v386_v52 }
  0x93   : > { %v409_v31 = vpop.permute.xlu1 %408  ;;  %v334_v32 = vpop.permute.xlu0 %333 }
  0x94   : > { %v387_v53 = vmul.f32 %v1297_v45, %v334_v32  ;;  %v388_v54 = vmul.f32 %v1299_v46, %v334_v32 }
  0x96   : > { %v443_v60 = vadd.f32 %v409_v31, %v387_v53  ;;  %v444_v61 = vadd.f32 %v409_v31, %v388_v54 }
  0x97   : > { %v344_v38 = vpop.permute.xlu0 %343 }
  0x98   : > { %v463_v41 = vpop.permute.xlu1 %462  ;;  %v391_v63 = vmul.f32 %v1297_v45, %v344_v38  ;;  %v392_v0 = vmul.f32 %v1299_v46, %v344_v38 }
  0x99   : > { %v509_v56 = vmul.f32 %v1301_v48, %v463_v41  ;;  %v510_v57 = vmul.f32 %v1303_v49, %v463_v41 }
  0x9b   : > { %v1295_v44 = vpop.permute.xlu0 %353  ;;  %v525_v5 = vadd.f32 %v509_v56, %v443_v60  ;;  %v526_v8 = vadd.f32 %v510_v57, %v444_v61 }
  0x9c   : > { %v395_v53 = vmul.f32 %v1297_v45, %v1295_v44  ;;  %v396_v54 = vmul.f32 %v1299_v46, %v1295_v44 }
  0x9d   : > { %v339_v47 = vpop.permute.xlu1 %338  ;;  %v542_v21 = vmax.f32 %v526_v8, 0.0  ;;  %v541_v22 = vmax.f32 %v525_v5, 0.0 }
  0x9e   : > { %v389_v6 = vmul.f32 %v1297_v45, %v339_v47  ;;  %v390_v7 = vmul.f32 %v1299_v46, %v339_v47 }
  0x9f   : > { %v1305_v50 = vpop.permute.xlu0 %363 }
  0xa1   : > { %v414_v55 = vpop.permute.xlu1 %413 }
  0xa2   : > { %v445_v11 = vadd.f32 %v414_v55, %v389_v6  ;;  %v446_v12 = vadd.f32 %v414_v55, %v390_v7 }
  0xa4   : > { %v459_v62 = vpop.permute.xlu0 %458 }
  0xa5   : > { %v507_v1 = vmul.f32 %v1301_v48, %v459_v62  ;;  %v508_v3 = vmul.f32 %v1303_v49, %v459_v62  ;;  %v419_v4 = vpop.permute.xlu1 %418 }
  0xa6   : > { %v447_v18 = vadd.f32 %v419_v4, %v391_v63  ;;  %v448_v19 = vadd.f32 %v419_v4, %v392_v0 }
  0xa7   : > { %v523_v9 = vadd.f32 %v507_v1, %v441_v58  ;;  %v524_v10 = vadd.f32 %v508_v3, %v442_v59 }
  0xa8   : > { %v467_v13 = vpop.permute.xlu0 %466 }
  0xa9   : > { %v511_v14 = vmul.f32 %v1301_v48, %v467_v13  ;;  %v512_v15 = vmul.f32 %v1303_v49, %v467_v13  ;;  %v540_v16 = vmax.f32 %v524_v10, 0.0  ;;  %v539_v17 = vmax.f32 %v523_v9, 0.0 }
  0xaa   : > { %v471_v20 = vpop.permute.xlu1 %470 }
  0xab   : > { %v527_v23 = vadd.f32 %v511_v14, %v445_v11  ;;  %v528_v24 = vadd.f32 %v512_v15, %v446_v12  ;;  %v513_v25 = vmul.f32 %v1301_v48, %v471_v20  ;;  %v514_v26 = vmul.f32 %v1303_v49, %v471_v20 }
  0xac   : > { %v564_v27 = vpack.c.bf16 %v542_v21, %v540_v16  ;;  %v563_v28 = vpack.c.bf16 %v541_v22, %v539_v17  ;;  %v475_v39 = vpop.permute.xlu0 %474  ;;  %v399_v16 = vmul.f32 %v1297_v45, %v1305_v50  ;;  %v400_v17 = vmul.f32 %v1299_v46, %v1305_v50  ;;  %v1019_v50 = vld [vmem:[%s1421_s3 + $0x18] sm:$0xff]  }
  0xad   : > { %v529_v29 = vadd.f32 %v513_v25, %v447_v18  ;;  %v530_v30 = vadd.f32 %v514_v26, %v448_v19  ;;  %v543_v31 = vmax.f32 %v527_v23, 0.0  ;;  %v544_v32 = vmax.f32 %v528_v24, 0.0 }
  0xae   : > { %652 = vmatprep.subr.bf16.mxu0 %v564_v27  ;;  %v515_v51 = vmul.f32 %v1301_v48, %v475_v39  ;;  %v516_v52 = vmul.f32 %v1303_v49, %v475_v39 }
  0xaf   : > { %v545_v33 = vmax.f32 %v529_v29, 0.0  ;;  %v546_v34 = vmax.f32 %v530_v30, 0.0  ;;  %653 = vmatpush1.bf16.msra.mxu0 %v563_v28  ;;  %v349_v35 = vpop.permute.xlu1 %348 }
  0xb0   : > { %v393_v40 = vmul.f32 %v1297_v45, %v349_v35  ;;  %v394_v41 = vmul.f32 %v1299_v46, %v349_v35  ;;  %v483_v10 = vpop.permute.xlu0 %482 }
  0xb1   : > { %v566_v36 = vpack.c.bf16 %v546_v34, %v544_v32  ;;  %v565_v37 = vpack.c.bf16 %v545_v33, %v543_v31  ;;  %v519_v14 = vmul.f32 %v1301_v48, %v483_v10  ;;  %v520_v15 = vmul.f32 %v1303_v49, %v483_v10 }
  0xb3   : > { %v424_v38 = vpop.permute.xlu1 %423  ;;  %654 = vmatprep.subr.bf16.mxu0 %v566_v36 }
  0xb4   : > { %655 = vmatpush1.bf16.msra.mxu0 %v565_v37  ;;  %v449_v43 = vadd.f32 %v424_v38, %v393_v40  ;;  %v450_v47 = vadd.f32 %v424_v38, %v394_v41 }
  0xb5   : > { %v587_v34 = vpop.permute.xlu0 %586 }
  0xb6   : > { %v531_v55 = vadd.f32 %v515_v51, %v449_v43  ;;  %v532_v56 = vadd.f32 %v516_v52, %v450_v47 }
  0xb7   : > { %v429_v42 = vpop.permute.xlu1 %428 }
  0xb8   : > { %v451_v58 = vadd.f32 %v429_v42, %v395_v53  ;;  %v452_v59 = vadd.f32 %v429_v42, %v396_v54  ;;  %v547_v0 = vmax.f32 %v531_v55, 0.0  ;;  %v548_v1 = vmax.f32 %v532_v56, 0.0 }
  0xbc   : > { %v479_v57 = vpop.permute.xlu1 %478 }
  0xbd   : > { %v517_v60 = vmul.f32 %v1301_v48, %v479_v57  ;;  %v518_v61 = vmul.f32 %v1303_v49, %v479_v57 }
  0xbf   : > { %v533_v62 = vadd.f32 %v517_v60, %v451_v58  ;;  %v534_v63 = vadd.f32 %v518_v61, %v452_v59 }
  0xc1   : > { %v549_v3 = vmax.f32 %v533_v62, 0.0  ;;  %v550_v4 = vmax.f32 %v534_v63, 0.0  ;;  %v359_v5 = vpop.permute.xlu1 %358 }
  0xc2   : > { %v397_v44 = vmul.f32 %v1297_v45, %v359_v5  ;;  %v398_v9 = vmul.f32 %v1299_v46, %v359_v5  ;;  %v1016_v46 = vld [vmem:[%s1421_s3] sm:$0xff]   ;;  %v602_v5 = vpop.permute.xlu0 %601 }
  0xc3   : > { %v568_v6 = vpack.c.bf16 %v550_v4, %v548_v1  ;;  %v567_v7 = vpack.c.bf16 %v549_v3, %v547_v0 }
  0xc5   : > { %v434_v8 = vpop.permute.xlu1 %433  ;;  %656 = vmatprep.subr.bf16.mxu0 %v568_v6 }
  0xc6   : > { %657 = vmatpush1.bf16.msra.mxu0 %v567_v7  ;;  %v453_v12 = vadd.f32 %v434_v8, %v397_v44  ;;  %v454_v13 = vadd.f32 %v434_v8, %v398_v9 }
  0xc8   : > { %v535_v18 = vadd.f32 %v519_v14, %v453_v12  ;;  %v536_v19 = vadd.f32 %v520_v15, %v454_v13 }
  0xc9   : > { %v439_v11 = vpop.permute.xlu1 %438 }
  0xca   : > { %v455_v21 = vadd.f32 %v439_v11, %v399_v16  ;;  %v456_v22 = vadd.f32 %v439_v11, %v400_v17  ;;  %v551_v27 = vmax.f32 %v535_v18, 0.0  ;;  %v552_v28 = vmax.f32 %v536_v19, 0.0 }
  0xce   : > { %v487_v20 = vpop.permute.xlu1 %486 }
  0xcf   : > { %v521_v23 = vmul.f32 %v1301_v48, %v487_v20  ;;  %v522_v24 = vmul.f32 %v1303_v49, %v487_v20  ;;  %v1017_v48 = vld [vmem:[%s1421_s3 + $0x8] sm:$0xff]   ;;  %v1018_v49 = vld [vmem:[%s1421_s3 + $0x10] sm:$0xff]   ;;  %v612_v20 = vpop.permute.xlu0 %611 }
  0xd1   : > { %v537_v25 = vadd.f32 %v521_v23, %v455_v21  ;;  %v538_v26 = vadd.f32 %v522_v24, %v456_v22 }
  0xd3   : > { %v553_v29 = vmax.f32 %v537_v25, 0.0  ;;  %v554_v30 = vmax.f32 %v538_v26, 0.0  ;;  %v582_v32 = vpop.permute.xlu1 %581 }
  0xd5   : > { %v570_v31 = vpack.c.bf16 %v554_v30, %v552_v28  ;;  %v569_v45 = vpack.c.bf16 %v553_v29, %v551_v27 }
  0xd7   : > { %658 = vmatprep.subr.bf16.mxu0 %v570_v31  ;;  %v592_v41 = vpop.permute.xlu1 %591 }
  0xd8   : > { %659 = vmatpush1.bf16.msra.mxu0 %v569_v45 }
  0xdb   : > { %935 = vmatmul.mubr.msk.bf16.vlgmr.msra.gmra.mrb[0].mxu0 %vm639_vm0, %v1016_v46  ;;  %v597_v57 = vpop.permute.xlu1 %596 }
  0xdc   : > { %694 = vmatprep.mubr.bf16.mxu0 %v1108_v2 }
  0xdf   : > { %v607_v9 = vpop.permute.xlu1 %606 }
  0xe3   : > { %936 = vmatmul.mubr.msk.bf16.gmra.mrb[4].mxu0 %vm639_vm0, %v1017_v48  ;;  %v617_v25 = vpop.permute.xlu1 %616 }
  0xe4   : > { %704 = vmatprep.mubr.bf16.mxu0 %v1108_v2 }
  0xeb   : > { %937 = vmatmul.mubr.msk.bf16.gmra.mrb[8].mxu0 %vm639_vm0, %v1018_v49 }
  0xec   : > { %714 = vmatprep.mubr.bf16.mxu0 %v1108_v2 }
  0xf3   : > { %938 = vmatmul.mubr.msk.bf16.gmra.mrb[12].mxu0 %vm639_vm0, %v1019_v50 }
 0x1ae   : > { %v686_v33 = vpop.f32.mrb[0].mxu0 }
 0x1af   : > { %v687_v35 = vadd.f32 %v686_v33, %v582_v32  ;;  %v688_v36 = vpop.f32.mrb[1].mxu0  ;;  %v754_v33 = vpop.permute.xlu0 %753 }
 0x1b0   : > { %v689_v37 = vadd.f32 %v688_v36, %v582_v32  ;;  %v690_v38 = vpop.f32.mrb[2].mxu0  ;;  %v741_v32 = vld [vmem:[%s1423_s5] sm:$0xf] }
 0x1b1   : > { %v691_v39 = vadd.f32 %v690_v38, %v587_v34  ;;  %v692_v40 = vpop.f32.mrb[3].mxu0  ;;  %v725_v43 = vmax.f32 %v687_v35, 0.0 }
 0x1b2   : > { %v693_v42 = vadd.f32 %v692_v40, %v587_v34  ;;  %v726_v2 = vmax.f32 %v689_v37, 0.0 }
 0x1b3   : > { %v727_v47 = vmax.f32 %v691_v39, 0.0 }
 0x1b4   : > { %v728_v51 = vmax.f32 %v693_v42, 0.0 }
 0x1b5   : > { %v742_v52 = vpack.c.bf16 %v727_v47, %v725_v43 }
 0x1b6   : > { %v696_v53 = vpop.f32.mrb[4].mxu0  ;;  %v743_v54 = vpack.c.bf16 %v728_v51, %v726_v2 }
 0x1b7   : > { %v697_v55 = vadd.f32 %v696_v53, %v592_v41  ;;  %v698_v56 = vpop.f32.mrb[5].mxu0 }
 0x1b8   : > { %v699_v58 = vadd.f32 %v698_v56, %v592_v41  ;;  %v700_v59 = vpop.f32.mrb[6].mxu0  ;;  %759 = vmatprep.subr.bf16.mxu1 %v743_v54 }
 0x1b9   : > { %v701_v60 = vadd.f32 %v700_v59, %v597_v57  ;;  %v702_v61 = vpop.f32.mrb[7].mxu0  ;;  %760 = vmatpush1.bf16.msra.mxu1 %v742_v52  ;;  %v729_v63 = vmax.f32 %v697_v55, 0.0 }
 0x1ba   : > { %v703_v62 = vadd.f32 %v702_v61, %v597_v57  ;;  %v730_v1 = vmax.f32 %v699_v58, 0.0 }
 0x1bb   : > { %v731_v0 = vmax.f32 %v701_v60, 0.0 }
 0x1bc   : > { %v732_v3 = vmax.f32 %v703_v62, 0.0 }
 0x1bd   : > { %v744_v4 = vpack.c.bf16 %v731_v0, %v729_v63 }
 0x1be   : > { %v745_v6 = vpack.c.bf16 %v732_v3, %v730_v1  ;;  %v706_v7 = vpop.f32.mrb[8].mxu0 }
 0x1bf   : > { %v707_v8 = vadd.f32 %v706_v7, %v602_v5  ;;  %v708_v44 = vpop.f32.mrb[9].mxu0 }
 0x1c0   : > { %v709_v10 = vadd.f32 %v708_v44, %v602_v5  ;;  %v710_v11 = vpop.f32.mrb[10].mxu0  ;;  %761 = vmatprep.subr.bf16.mxu1 %v745_v6 }
 0x1c1   : > { %v711_v12 = vadd.f32 %v710_v11, %v607_v9  ;;  %v712_v13 = vpop.f32.mrb[11].mxu0  ;;  %762 = vmatpush1.bf16.msra.mxu1 %v744_v4  ;;  %v733_v15 = vmax.f32 %v707_v8, 0.0 }
 0x1c2   : > { %v713_v14 = vadd.f32 %v712_v13, %v607_v9  ;;  %v734_v17 = vmax.f32 %v709_v10, 0.0 }
 0x1c3   : > { %v735_v16 = vmax.f32 %v711_v12, 0.0 }
 0x1c4   : > { %v736_v18 = vmax.f32 %v713_v14, 0.0 }
 0x1c5   : > { %v746_v19 = vpack.c.bf16 %v735_v16, %v733_v15 }
 0x1c6   : > { %v747_v21 = vpack.c.bf16 %v736_v18, %v734_v17  ;;  %v716_v22 = vpop.f32.mrb[12].mxu0 }
 0x1c7   : > { %v717_v23 = vadd.f32 %v716_v22, %v612_v20  ;;  %v718_v24 = vpop.f32.mrb[13].mxu0 }
 0x1c8   : > { %v719_v26 = vadd.f32 %v718_v24, %v612_v20  ;;  %v720_v27 = vpop.f32.mrb[14].mxu0  ;;  %763 = vmatprep.subr.bf16.mxu1 %v747_v21 }
 0x1c9   : > { %v721_v28 = vadd.f32 %v720_v27, %v617_v25  ;;  %v722_v29 = vpop.f32.mrb[15].mxu0  ;;  %764 = vmatpush1.bf16.msra.mxu1 %v746_v19  ;;  %v737_v31 = vmax.f32 %v717_v23, 0.0 }
 0x1ca   : > { %v723_v30 = vadd.f32 %v722_v29, %v617_v25  ;;  %v738_v46 = vmax.f32 %v719_v26, 0.0 }
 0x1cb   : > { %v739_v45 = vmax.f32 %v721_v28, 0.0 }
 0x1cc   : > { %v740_v48 = vmax.f32 %v723_v30, 0.0 }
 0x1cd   : > { %v748_v49 = vpack.c.bf16 %v739_v45, %v737_v31 }
 0x1ce   : > { %v749_v50 = vpack.c.bf16 %v740_v48, %v738_v46 }
 0x1d0   : > { %765 = vmatprep.subr.bf16.mxu1 %v749_v50 }
 0x1d1   : > { %766 = vmatpush1.bf16.msra.mxu1 %v748_v49 }
 0x1d4   : > { %939 = vmatmul.mubr.msk.bf16.vlgmr.msra.gmra.mrb[0].mxu1 %vm639_vm0, %v741_v32 }
 0x2a7   : > { %v793_v34 = vpop.f32.mrb[0].mxu1 }
 0x2a8   : > { %v794_v35 = vadd.f32 %v793_v34, %v754_v33  ;;  %v795_v36 = vpop.f32.mrb[1].mxu1 }
 0x2a9   : > { %v796_v37 = vadd.f32 %v795_v36, %v754_v33  ;;  %v797_v38 = vpop.f32.mrb[2].mxu1 }
 0x2aa   : > { %v802_v39 = vmul.f32 1.442695, %v794_v35  ;;  %v798_v40 = vpop.f32.mrb[3].mxu1  ;;  %vm800_vm2 = vcmp.gt.f32.partialorder %v794_v35, 20.0 }
 0x2ab   : > { %v804_v41 = vmul.f32 1.442695, %v796_v37  ;;  %vm801_vm4 = vcmp.gt.f32.partialorder %v796_v37, 20.0 }
 0x2ac   : > { %1020 = vpow2.f32 %v802_v39 }
 0x2ad   : > { %1022 = vpow2.f32 %v804_v41 }
 0x2b6   : > { %v1021_v42 = vpop.eup %1020 }
 0x2b7   : > { %v1023_v43 = vpop.eup %1022  ;;  %v806_v47 = vadd.f32 1.0, %v1021_v42  ;;  %v809_v51 = vmul.f32 -0.5, %v1021_v42  ;;  %v812_v54 = vand.u32 2147483647, %v1021_v42 }
 0x2b8   : > { %v815_v2 = vadd.f32 1.0, %v1023_v43  ;;  %v818_v52 = vmul.f32 -0.5, %v1023_v43  ;;  %v821_v56 = vand.u32 2147483647, %v1023_v43 }
 0x2b9   : > { %1024 = vlog2.f32 %v806_v47  ;;  %v810_v53 = vadd.f32 1.0, %v809_v51  ;;  %vm813_vm1 = vcmp.lt.f32.partialorder %v812_v54, 0.0004427343 }
 0x2ba   : > { %1026 = vlog2.f32 %v815_v2  ;;  %v819_v55 = vadd.f32 1.0, %v818_v52  ;;  %vm822_vm3 = vcmp.lt.f32.partialorder %v821_v56, 0.0004427343 }
 0x2bb   : > { %v811_v60 = vmul.f32 %v1021_v42, %v810_v53 }
 0x2bc   : > { %v820_v62 = vmul.f32 %v1023_v43, %v819_v55 }
 0x2c3   : > { %v1025_v57 = vpop.eup %1024 }
 0x2c4   : > { %v1027_v58 = vpop.eup %1026  ;;  %v808_v59 = vmul.f32 0.6931472, %v1025_v57 }
 0x2c5   : > { %v817_v61 = vmul.f32 0.6931472, %v1027_v58 }
 0x2c6   : > { %v814_v63 = vsel %vm813_vm1, %v811_v60, %v808_v59 }
 0x2c7   : > { %v824_v0 = vsel %vm800_vm2, %v794_v35, %v814_v63  ;;  %v823_v1 = vsel %vm822_vm3, %v820_v62, %v817_v61 }
 0x2c8   : > { %v826_v3 = vadd.f32 1e-06, %v824_v0  ;;  %v825_v4 = vsel %vm801_vm4, %v796_v37, %v823_v1 }
 0x2c9   : > { %v827_v5 = vadd.f32 1e-06, %v825_v4 }
 0x2ca   : > { %828 = vst [vmem:[%s296_s18] sm:$0xff] %v826_v3 }
 0x2cb   : > { %829 = vst [vmem:[%s296_s18 + $0x8] sm:$0xff] %v827_v5 }
 0x2cc   : > { %1041 = shalt.err (!%p1038_p5)
}
 0x2cd   : > { %s1042_s12 = scalar_lea.hbm %s1371_s22, 256  ;;  %s1046_s17 = scalar_lea.hbm %s1425_s7, 512 }
 0x2ce   : > { %p1043_p6 = scmp.ne.s32.totalorder %s1371_s22, %s1042_s12  ;;  %p1047_p10 = scmp.lt.u32.totalorder %s1371_s22, %s1425_s7 }
 0x2cf   : > { %p1048_p11 = scmp.lt.u32.totalorder %s1046_s17, %s1042_s12  ;;  %p1050_p13 = scmp.lt.u32.totalorder %s1042_s12, %s1371_s22 }
 0x2d0   : > { %p1044_p7 = pnand %p1043_p6, %p1191_p4 }
 0x2d1   : > { %p1049_p12 = por %p1048_p11, %p1047_p10 }
 0x2d2   : > { %p1045_p9 = pneg %p1044_p7 }
 0x2d3   : > { %p1051_p0 = por %p1050_p13, %p1049_p12 }
 0x2d5   : > { %p1052_p1 = pnand %p1051_p0, %p1045_p9 }
 0x2d7   : > { %1055 = shalt.err (!%p1052_p1)
}
 0x2d8   : > { %947 = dma.vmem_to_hbm [thread:$0]  (%p1191_p4), %s1373_s19, 256, %s1371_s22, %s831_s27  }
 0x2d9 PF: > { %p953_p2 = scmp.ge.s32.totalorder %s1106_s29, 2  ;;  %s859_s21 = sand.u32 1, %s1086_s24  }
 0x2da   : > { %s860_s23 = scalar_lea.sflag [#allocation3], %s859_s21 }
 0x2db   : > { %p950_p3 = pnand %p953_p2, %p1198_p8 }
 0x2dd   : > { %1081 = dma.done.wait (!%p950_p3), %s860_s23, 256  }
 0x2de   : > { %1083 = vsyncadd (!%p950_p3), %s860_s23, 4294967040  ;;  %s20_s29 = sadd.s32 1, %s1106_s29   ;;  %s1428_s24 = smov %s1090_s25 }
 0x2df   : > { %p17_p5 = scmp.ge.s32.totalorder %s20_s29, 4   ;;  %s1429_s25 = smov %s1094_s26 }
 0x2e0   : > { %s1430_s26 = smov %s1204_s14  ;;  %s1431_s27 = smov %s1102_s28 }
 0x2e1   : > { %s1432_s28 = smov %s1434_s9  ;;  %19 = sbr.rel (!%p17_p5) target bundleno = 4 (0x4), region = 83 }
 0x2e8   :  { %865 = vsyncpa [#allocation3], 1 }
 0x2e9   :  { %867 = vsyncpa [#allocation3 + $0x1], 1 }

</bundles_post_ra>
